<compile_context>
chip_gen: v7x
topology: tpu7x:2x2x1
jax: 0.10.0
libtpu: 0.0.40
codegen_flags: <defaults>
</compile_context>

<pallas_src>
import functools

import jax
import jax.numpy as jnp
from jax import lax
from jax.experimental import pallas as pl
from jax.experimental.pallas import tpu as pltpu

# GradientProjection defaults.
NUM_STEPS = 3
STEP_SIZE = 0.01
DECAY = 0.1

_LANE = 128
_SUBLANE = 8


def _cdiv(a, b):
    return -(-a // b)


def _round_up(v, m):
    return _cdiv(v, m) * m


def _choose_batch_tile(B, block_b):
    """Balanced batch tiles, multiple of 8, >=2 tiles when possible (v7x)."""
    n_tiles = max(1, _cdiv(B, max(block_b, _SUBLANE)))
    tb = _round_up(_cdiv(B, n_tiles), _SUBLANE)
    # v7x megacore: prefer at least two batch tiles so ("parallel",) grid
    # semantics can feed both TensorCores. Harmless on v5e/v6e (single TC).
    if _cdiv(B, tb) < 2 and B > _SUBLANE:
        tb = _round_up(_cdiv(B, 2), _SUBLANE)
    return tb


def _grad_proj_kernel(x_ref, a_ref, b_ref, out_ref, *, num_steps, step_size,
                      decay, m_true, mxu_dtype):
    """Runs the whole projected-gradient loop on one batch tile.

    x_ref:   [TB, N_pad]     decision variables (batch tile), f32
    a_ref:   [M_pad, N_pad]  constraint matrix A (A x <= b), mxu_dtype
    b_ref:   [1, M_pad]      constraint rhs (padding entries = +1), f32
    out_ref: [TB, N_pad]     updated decision variables, f32
    """
    x = x_ref[...]            # f32 running iterate / accumulator
    a = a_ref[...]            # resident constraint matrix (bf16 by default)
    b = b_ref[...]            # f32 threshold row

    # num_steps is a small static int -> unrolled at trace time.
    for k in range(num_steps):
        # z_raw = x @ A^T without materializing A^T: contract dim 1 of both
        # operands (MXU, trans-RHS contraction). f32 accumulation.
        z = lax.dot_general(
            x.astype(mxu_dtype), a,
            dimension_numbers=(((1,), (1,)), ((), ())),
            preferred_element_type=jnp.float32)          # (TB, M_pad)
        # relu'(Ax - b) with decay**k * step_size / M folded in; the -b is
        # folded into the compare so no (TB, M_pad) subtract is materialized.
        coef = jnp.float32((decay ** k) * step_size / m_true)
        scaled_mask = jnp.where(z > b, coef, jnp.float32(0.0))
        # gradient step: x <- x - scaled_mask @ A   (MXU, f32 accumulate)
        x = x - jnp.dot(scaled_mask.astype(mxu_dtype), a,
                        preferred_element_type=jnp.float32)

    out_ref[...] = x.astype(out_ref.dtype)


def _xla_gradient_projection(x, A, b, *, num_steps=NUM_STEPS,
                             step_size=STEP_SIZE, decay=DECAY):
    """Pure-JAX path mirroring GradientProjection.forward semantics."""
    x = x.astype(jnp.float32)
    A = A.astype(jnp.float32)
    b = b.astype(jnp.float32).reshape(1, -1)
    m = A.shape[0]
    for k in range(num_steps):
        z = x @ A.T - b
        mask = (z > 0).astype(jnp.float32)
        grad = mask @ A / m
        x = x - (decay ** k) * step_size * grad
    return x


def gradient_projection_solver(x, A, b, *, num_steps=NUM_STEPS,
                               step_size=STEP_SIZE, decay=DECAY,
                               block_b=512, mxu_dtype=jnp.bfloat16,
                               force_pallas=False):
    """Lane-dense zero-padded, batch-tiled GradientProjection solver."""
    B, N = x.shape
    M = A.shape[0]
    f32 = jnp.float32

    # Tiny problems: padding to (128,128) tiles inflates FLOPs 10-30x and the
    # call is dominated by fixed pallas_call overhead -> plain XLA wins.
    if not force_pallas and (M * N < _LANE * _LANE and B <= _LANE):
        return _xla_gradient_projection(x, A, b, num_steps=num_steps,
                                        step_size=step_size, decay=decay)

    n_pad = _round_up(N, _LANE)
    m_pad = _round_up(M, _LANE)
    tb = _choose_batch_tile(B, block_b)
    b_rows = _round_up(B, tb)
    grid = (b_rows // tb,)

    kernel = functools.partial(_grad_proj_kernel, num_steps=num_steps,
                               step_size=step_size, decay=decay, m_true=M,
                               mxu_dtype=mxu_dtype)

    a_itemsize = jnp.dtype(mxu_dtype).itemsize
    flops = 4 * num_steps * b_rows * m_pad * n_pad
    bytes_accessed = (2 * 4 * b_rows * n_pad          # x in + out (f32)
                      + m_pad * n_pad * a_itemsize    # A (read once, resident)
                      + 4 * m_pad)                    # b

    # VMEM budget: resident A (allow 2x in case single-buffering is refused),
    # double-buffered x in/out tiles, in-kernel (TB, M_pad) temporaries.
    a_bytes = m_pad * n_pad * a_itemsize
    io_tile_bytes = tb * n_pad * 4
    tmp_bytes = tb * m_pad * 4
    vmem_need = 2 * a_bytes + 4 * io_tile_bytes + 4 * tmp_bytes + 2 * 4 * m_pad
    vmem_limit = int(min(max(int(1.5 * vmem_need) + (4 << 20), 48 << 20),
                         100 << 20))

    def _make_fn(single_buffer_residents):
        res_kw = ({"pipeline_mode": pl.Buffered(1)}
                  if single_buffer_residents else {})
        call = pl.pallas_call(
            kernel,
            out_shape=jax.ShapeDtypeStruct((b_rows, n_pad), f32),
            grid=grid,
            in_specs=[
                # x streams through the pipeline, one batch tile per step.
                pl.BlockSpec((tb, n_pad), lambda i: (i, 0)),
                # A and b are grid-invariant (resident, ideally single-buffer).
                pl.BlockSpec((m_pad, n_pad), lambda i: (0, 0), **res_kw),
                pl.BlockSpec((1, m_pad), lambda i: (0, 0), **res_kw),
            ],
            out_specs=pl.BlockSpec((tb, n_pad), lambda i: (i, 0)),
            input_output_aliases={0: 0},   # reuse the padded-x HBM buffer
            compiler_params=pltpu.CompilerParams(
                dimension_semantics=("parallel",),
                vmem_limit_bytes=vmem_limit),
            cost_estimate=pl.CostEstimate(flops=int(flops), transcendentals=0,
                                          bytes_accessed=int(bytes_accessed)),
        )

        def fn(x_in, a_in, b_in):
            # Zero-padding is inert: padded A rows/cols are zero (no gradient
            # contribution); padded b entries are +1 so 0 > 1 is False and the
            # padded constraints never enter the mask.
            x_p = jnp.zeros((b_rows, n_pad), f32).at[:B, :N].set(
                x_in.astype(f32))
            a_p = jnp.zeros((m_pad, n_pad), f32).at[:M, :N].set(
                a_in.astype(f32)).astype(mxu_dtype)
            b_p = jnp.full((1, m_pad), 1.0, f32).at[:, :M].set(
                b_in.astype(f32).reshape(1, M))
            out_p = call(x_p, a_p, b_p)
            return out_p[:B, :N]

        return jax.jit(fn)

    try:
        return _make_fn(True)(x, A, b)
    except Exception:
        # pl.Buffered(1) rejected by this jax/libtpu for the top-level
        # pipeline: fall back to default double-buffered resident blocks
        # (numerically identical, just more VMEM).
        return _make_fn(False)(x, A, b)


if __name__ == "__main__":
    key = jax.random.PRNGKey(0)
    k_x, k_A, k_b = jax.random.split(key, 3)

    B, N, M = 8, 32, 16          # batch, decision vars, constraints

    x = jax.random.normal(k_x, (B, N), dtype=jnp.float32)
    A = jax.random.normal(k_A, (M, N), dtype=jnp.float32)
    b = jax.random.normal(k_b, (1, M), dtype=jnp.float32)

    ref = _xla_gradient_projection(x, A, b)

    # 1) f32 MXU operands: must match the reference tightly.
    out_f32 = gradient_projection_solver(x, A, b, mxu_dtype=jnp.float32,
                                         force_pallas=True)
    out_f32 = jax.block_until_ready(out_f32)
    assert out_f32.shape == (B, N) and out_f32.dtype == jnp.float32
    assert jnp.allclose(out_f32, ref, atol=1e-5, rtol=1e-4), \
        "f32 kernel mismatch vs reference"

    # 2) default bf16 MXU operands (the performance configuration): relaxed
    #    tolerance — mask decisions for z very near the boundary may flip vs
    #    the f32 reference; per-step deltas are O(1e-3) at these settings.
    out_bf16 = gradient_projection_solver(x, A, b, force_pallas=True)
    out_bf16 = jax.block_until_ready(out_bf16)
    assert out_bf16.shape == (B, N) and out_bf16.dtype == jnp.float32
    assert jnp.allclose(out_bf16, ref, atol=5e-3, rtol=1e-2), \
        "bf16 kernel mismatch vs reference"

    print("KERNEL_OK")
</pallas_src>

<mosaic_0001>
module attributes {stable_mosaic.version = 11 : i64} {
  func.func @_grad_proj_kernel(%arg0: i32, %arg1: memref<8x128xf32, #tpu.memory_space<vmem>>, %arg2: memref<128x128xf32, #tpu.memory_space<vmem>>, %arg3: memref<1x128xf32, #tpu.memory_space<vmem>>, %arg4: memref<8x128xf32, #tpu.memory_space<vmem>>) attributes {dimension_semantics = [#tpu.dimension_semantics<parallel>], iteration_bounds = array<i64: 1>, scalar_prefetch = 0 : i64, scratch_operands = 0 : i64, tpu.core_type = #tpu.core_type<tc>, window_params = [{transform_indices = @transform_0, window_bounds = array<i64: 8, 128>}, {pipeline_mode = #tpu.pipeline_mode<synchronous>, transform_indices = @transform_1, window_bounds = array<i64: 128, 128>}, {pipeline_mode = #tpu.pipeline_mode<synchronous>, transform_indices = @transform_2, window_bounds = array<i64: 1, 128>}, {transform_indices = @transform_3, window_bounds = array<i64: 8, 128>}]} {
    %c0 = arith.constant 0 : index
    %c0_0 = arith.constant 0 : index
    %0 = vector.load %arg1[%c0, %c0_0] : memref<8x128xf32, #tpu.memory_space<vmem>>, vector<8x128xf32>
    %c0_1 = arith.constant 0 : index
    %c0_2 = arith.constant 0 : index
    %1 = vector.load %arg2[%c0_1, %c0_2] : memref<128x128xf32, #tpu.memory_space<vmem>>, vector<128x128xf32>
    %c0_3 = arith.constant 0 : index
    %c0_4 = arith.constant 0 : index
    %2 = vector.load %arg3[%c0_3, %c0_4] : memref<1x128xf32, #tpu.memory_space<vmem>>, vector<1x128xf32>
    %cst = arith.constant dense<0.000000e+00> : vector<8x128xf32>
    %3 = tpu.matmul %0, %1, %cst {dimension_numbers = #tpu.dot_dimension_numbers<[1], [1], [0], [0], [0, 0, 1, 0], [], []>} : vector<8x128xf32>, vector<128x128xf32>, vector<8x128xf32> -> vector<8x128xf32>
    %4 = vector.broadcast %2 : vector<1x128xf32> to vector<8x128xf32>
    %5 = arith.cmpf ogt, %3, %4 : vector<8x128xf32>
    %cst_5 = arith.constant 6.250000e-04 : f32
    %cst_6 = arith.constant 0.000000e+00 : f32
    %6 = vector.broadcast %cst_5 : f32 to vector<8x128xf32>
    %7 = vector.broadcast %cst_6 : f32 to vector<8x128xf32>
    %8 = arith.select %5, %6, %7 : vector<8x128xi1>, vector<8x128xf32>
    %cst_7 = arith.constant dense<0.000000e+00> : vector<8x128xf32>
    %9 = tpu.matmul %8, %1, %cst_7 {dimension_numbers = #tpu.dot_dimension_numbers<[1], [0], [0], [1], [0, 0, 1, 1], [], []>} : vector<8x128xf32>, vector<128x128xf32>, vector<8x128xf32> -> vector<8x128xf32>
    %10 = arith.subf %0, %9 : vector<8x128xf32>
    %cst_8 = arith.constant dense<0.000000e+00> : vector<8x128xf32>
    %11 = tpu.matmul %10, %1, %cst_8 {dimension_numbers = #tpu.dot_dimension_numbers<[1], [1], [0], [0], [0, 0, 1, 0], [], []>} : vector<8x128xf32>, vector<128x128xf32>, vector<8x128xf32> -> vector<8x128xf32>
    %12 = vector.broadcast %2 : vector<1x128xf32> to vector<8x128xf32>
    %13 = arith.cmpf ogt, %11, %12 : vector<8x128xf32>
    %cst_9 = arith.constant 6.250000e-05 : f32
    %cst_10 = arith.constant 0.000000e+00 : f32
    %14 = vector.broadcast %cst_9 : f32 to vector<8x128xf32>
    %15 = vector.broadcast %cst_10 : f32 to vector<8x128xf32>
    %16 = arith.select %13, %14, %15 : vector<8x128xi1>, vector<8x128xf32>
    %cst_11 = arith.constant dense<0.000000e+00> : vector<8x128xf32>
    %17 = tpu.matmul %16, %1, %cst_11 {dimension_numbers = #tpu.dot_dimension_numbers<[1], [0], [0], [1], [0, 0, 1, 1], [], []>} : vector<8x128xf32>, vector<128x128xf32>, vector<8x128xf32> -> vector<8x128xf32>
    %18 = arith.subf %10, %17 : vector<8x128xf32>
    %cst_12 = arith.constant dense<0.000000e+00> : vector<8x128xf32>
    %19 = tpu.matmul %18, %1, %cst_12 {dimension_numbers = #tpu.dot_dimension_numbers<[1], [1], [0], [0], [0, 0, 1, 0], [], []>} : vector<8x128xf32>, vector<128x128xf32>, vector<8x128xf32> -> vector<8x128xf32>
    %20 = vector.broadcast %2 : vector<1x128xf32> to vector<8x128xf32>
    %21 = arith.cmpf ogt, %19, %20 : vector<8x128xf32>
    %cst_13 = arith.constant 6.250000e-06 : f32
    %cst_14 = arith.constant 0.000000e+00 : f32
    %22 = vector.broadcast %cst_13 : f32 to vector<8x128xf32>
    %23 = vector.broadcast %cst_14 : f32 to vector<8x128xf32>
    %24 = arith.select %21, %22, %23 : vector<8x128xi1>, vector<8x128xf32>
    %cst_15 = arith.constant dense<0.000000e+00> : vector<8x128xf32>
    %25 = tpu.matmul %24, %1, %cst_15 {dimension_numbers = #tpu.dot_dimension_numbers<[1], [0], [0], [1], [0, 0, 1, 1], [], []>} : vector<8x128xf32>, vector<128x128xf32>, vector<8x128xf32> -> vector<8x128xf32>
    %26 = arith.subf %18, %25 : vector<8x128xf32>
    %c0_16 = arith.constant 0 : index
    %c0_17 = arith.constant 0 : index
    %27 = vector.load %arg4[%c0_16, %c0_17] : memref<8x128xf32, #tpu.memory_space<vmem>>, vector<8x128xf32>
    tpu.vector_store %arg4[%c0_16, %c0_17], %26 {strides = array<i32>} : memref<8x128xf32, #tpu.memory_space<vmem>>, vector<8x128xf32>,
    return
  }
  func.func @transform_0(%arg0: i32) -> (i32, i32) {
    %c0_i32 = arith.constant 0 : i32
    %c0_i32_0 = arith.constant 0 : i32
    return %arg0, %c0_i32 : i32, i32
  }
  func.func @transform_1(%arg0: i32) -> (i32, i32) {
    %c0_i32 = arith.constant 0 : i32
    %c0_i32_0 = arith.constant 0 : i32
    %c0_i32_1 = arith.constant 0 : i32
    return %c0_i32, %c0_i32_0 : i32, i32
  }
  func.func @transform_2(%arg0: i32) -> (i32, i32) {
    %c0_i32 = arith.constant 0 : i32
    %c0_i32_0 = arith.constant 0 : i32
    %c0_i32_1 = arith.constant 0 : i32
    return %c0_i32, %c0_i32_0 : i32, i32
  }
  func.func @transform_3(%arg0: i32) -> (i32, i32) {
    %c0_i32 = arith.constant 0 : i32
    %c0_i32_0 = arith.constant 0 : i32
    return %arg0, %c0_i32 : i32, i32
  }
}

module attributes {stable_mosaic.version = 11 : i64} {
  func.func @_grad_proj_kernel(%arg0: i32, %arg1: memref<8x128xf32, #tpu.memory_space<vmem>>, %arg2: memref<128x128xf32, #tpu.memory_space<vmem>>, %arg3: memref<1x128xf32, #tpu.memory_space<vmem>>, %arg4: memref<8x128xf32, #tpu.memory_space<vmem>>) attributes {dimension_semantics = [#tpu.dimension_semantics<parallel>], iteration_bounds = array<i64: 1>, scalar_prefetch = 0 : i64, scratch_operands = 0 : i64, tpu.core_type = #tpu.core_type<tc>, window_params = [{transform_indices = @transform_0, window_bounds = array<i64: 8, 128>}, {pipeline_mode = #tpu.pipeline_mode<synchronous>, transform_indices = @transform_1, window_bounds = array<i64: 128, 128>}, {pipeline_mode = #tpu.pipeline_mode<synchronous>, transform_indices = @transform_2, window_bounds = array<i64: 1, 128>}, {transform_indices = @transform_3, window_bounds = array<i64: 8, 128>}]} {
    %c0 = arith.constant 0 : index
    %c0_0 = arith.constant 0 : index
    %0 = vector.load %arg1[%c0, %c0_0] : memref<8x128xf32, #tpu.memory_space<vmem>>, vector<8x128xf32>
    %c0_1 = arith.constant 0 : index
    %c0_2 = arith.constant 0 : index
    %1 = vector.load %arg2[%c0_1, %c0_2] : memref<128x128xf32, #tpu.memory_space<vmem>>, vector<128x128xf32>
    %c0_3 = arith.constant 0 : index
    %c0_4 = arith.constant 0 : index
    %2 = vector.load %arg3[%c0_3, %c0_4] : memref<1x128xf32, #tpu.memory_space<vmem>>, vector<1x128xf32>
    %cst = arith.constant dense<0.000000e+00> : vector<8x128xf32>
    %3 = tpu.matmul %0, %1, %cst {dimension_numbers = #tpu.dot_dimension_numbers<[1], [1], [0], [0], [0, 0, 1, 0], [], []>} : vector<8x128xf32>, vector<128x128xf32>, vector<8x128xf32> -> vector<8x128xf32>
    %4 = vector.broadcast %2 : vector<1x128xf32> to vector<8x128xf32>
    %5 = arith.cmpf ogt, %3, %4 : vector<8x128xf32>
    %cst_5 = arith.constant 6.250000e-04 : f32
    %cst_6 = arith.constant 0.000000e+00 : f32
    %6 = vector.broadcast %cst_5 : f32 to vector<8x128xf32>
    %7 = vector.broadcast %cst_6 : f32 to vector<8x128xf32>
    %8 = arith.select %5, %6, %7 : vector<8x128xi1>, vector<8x128xf32>
    %cst_7 = arith.constant dense<0.000000e+00> : vector<8x128xf32>
    %9 = tpu.matmul %8, %1, %cst_7 {dimension_numbers = #tpu.dot_dimension_numbers<[1], [0], [0], [1], [0, 0, 1, 1], [], []>} : vector<8x128xf32>, vector<128x128xf32>, vector<8x128xf32> -> vector<8x128xf32>
    %10 = arith.subf %0, %9 : vector<8x128xf32>
    %cst_8 = arith.constant dense<0.000000e+00> : vector<8x128xf32>
    %11 = tpu.matmul %10, %1, %cst_8 {dimension_numbers = #tpu.dot_dimension_numbers<[1], [1], [0], [0], [0, 0, 1, 0], [], []>} : vector<8x128xf32>, vector<128x128xf32>, vector<8x128xf32> -> vector<8x128xf32>
    %12 = vector.broadcast %2 : vector<1x128xf32> to vector<8x128xf32>
    %13 = arith.cmpf ogt, %11, %12 : vector<8x128xf32>
    %cst_9 = arith.constant 6.250000e-05 : f32
    %cst_10 = arith.constant 0.000000e+00 : f32
    %14 = vector.broadcast %cst_9 : f32 to vector<8x128xf32>
    %15 = vector.broadcast %cst_10 : f32 to vector<8x128xf32>
    %16 = arith.select %13, %14, %15 : vector<8x128xi1>, vector<8x128xf32>
    %cst_11 = arith.constant dense<0.000000e+00> : vector<8x128xf32>
    %17 = tpu.matmul %16, %1, %cst_11 {dimension_numbers = #tpu.dot_dimension_numbers<[1], [0], [0], [1], [0, 0, 1, 1], [], []>} : vector<8x128xf32>, vector<128x128xf32>, vector<8x128xf32> -> vector<8x128xf32>
    %18 = arith.subf %10, %17 : vector<8x128xf32>
    %cst_12 = arith.constant dense<0.000000e+00> : vector<8x128xf32>
    %19 = tpu.matmul %18, %1, %cst_12 {dimension_numbers = #tpu.dot_dimension_numbers<[1], [1], [0], [0], [0, 0, 1, 0], [], []>} : vector<8x128xf32>, vector<128x128xf32>, vector<8x128xf32> -> vector<8x128xf32>
    %20 = vector.broadcast %2 : vector<1x128xf32> to vector<8x128xf32>
    %21 = arith.cmpf ogt, %19, %20 : vector<8x128xf32>
    %cst_13 = arith.constant 6.250000e-06 : f32
    %cst_14 = arith.constant 0.000000e+00 : f32
    %22 = vector.broadcast %cst_13 : f32 to vector<8x128xf32>
    %23 = vector.broadcast %cst_14 : f32 to vector<8x128xf32>
    %24 = arith.select %21, %22, %23 : vector<8x128xi1>, vector<8x128xf32>
    %cst_15 = arith.constant dense<0.000000e+00> : vector<8x128xf32>
    %25 = tpu.matmul %24, %1, %cst_15 {dimension_numbers = #tpu.dot_dimension_numbers<[1], [0], [0], [1], [0, 0, 1, 1], [], []>} : vector<8x128xf32>, vector<128x128xf32>, vector<8x128xf32> -> vector<8x128xf32>
    %26 = arith.subf %18, %25 : vector<8x128xf32>
    %c0_16 = arith.constant 0 : index
    %c0_17 = arith.constant 0 : index
    %27 = vector.load %arg4[%c0_16, %c0_17] : memref<8x128xf32, #tpu.memory_space<vmem>>, vector<8x128xf32>
    tpu.vector_store %arg4[%c0_16, %c0_17], %26 {strides = array<i32>} : memref<8x128xf32, #tpu.memory_space<vmem>>, vector<8x128xf32>,
    return
  }
  func.func @transform_0(%arg0: i32) -> (i32, i32) {
    %c0_i32 = arith.constant 0 : i32
    %c0_i32_0 = arith.constant 0 : i32
    return %arg0, %c0_i32 : i32, i32
  }
  func.func @transform_1(%arg0: i32) -> (i32, i32) {
    %c0_i32 = arith.constant 0 : i32
    %c0_i32_0 = arith.constant 0 : i32
    %c0_i32_1 = arith.constant 0 : i32
    return %c0_i32, %c0_i32_0 : i32, i32
  }
  func.func @transform_2(%arg0: i32) -> (i32, i32) {
    %c0_i32 = arith.constant 0 : i32
    %c0_i32_0 = arith.constant 0 : i32
    %c0_i32_1 = arith.constant 0 : i32
    return %c0_i32, %c0_i32_0 : i32, i32
  }
  func.func @transform_3(%arg0: i32) -> (i32, i32) {
    %c0_i32 = arith.constant 0 : i32
    %c0_i32_0 = arith.constant 0 : i32
    return %arg0, %c0_i32 : i32, i32
  }
}

</mosaic_0001>

<bundles_post_ra>
// kernel: fn.1
= control target key start
LH: loop header
LB: loop body
LE: loop exit
PB: predicated region body
PF: predicated region fallthrough
CT: control target
= control target key end

     0   :  { %v938_v0 = vmov 0.0|0.0   ;;  %vm939_vm0 = vmmov 0   ;;  %v940_v3 = vmov 0.0   ;;  %v941_v30 = vmov 0.000625   ;;  %s1150_s1 = inlined_call_operand.vmem [shape: f32[128,128], index: 1, kind: input, shape index: {}]   ;;  %s1151_s0 = inlined_call_operand.vmem [shape: f32[8,128], index: 0, kind: input, shape index: {}, may-alias: {0,3}]   ;;  %s1152_s2 = inlined_call_operand.vmem [shape: f32[1,128], index: 2, kind: input, shape index: {}]   ;;  %s1153_s3 = inlined_call_operand.vmem [shape: f32[8,128], index: 3, kind: output, shape index: {}, may-alias: {0,3}]  }
   0x1   :  { %788 = vmatprep.subr.bf16.mxu0 %v938_v0  ;;  %v15_v1 = vld [vmem:[%s1150_s1] sm:$0xff]  ;;  %v16_v2 = vld [vmem:[%s1150_s1 + $0x8] sm:$0xff]  ;;  %610 = vmatprep.mubr.msk.f32.mxu0 %vm939_vm0, %v940_v3  ;;  %v17_v5 = vld [vmem:[%s1150_s1 + $0x10] sm:$0xff]  ;;  %v942_v36 = vmov 6.25e-05  }
   0x2   :  { %v973_v4 = vpack.c.bf16 %v16_v2, %v15_v1  ;;  %812 = vmatprep.subr.bf16.mxu1 %v938_v0  ;;  %645 = vmatprep.mubr.msk.f32.mxu1 %vm939_vm0, %v940_v3  ;;  %v18_v6 = vld [vmem:[%s1150_s1 + $0x18] sm:$0xff]  ;;  %v19_v8 = vld [vmem:[%s1150_s1 + $0x20] sm:$0xff]  ;;  %v20_v9 = vld [vmem:[%s1150_s1 + $0x28] sm:$0xff]  ;;  %v943_v42 = vmov 6.25e-06  }
   0x3   :  { %v988_v7 = vpack.c.bf16 %v18_v6, %v17_v5  ;;  %v998_v10 = vpack.c.bf16 %v20_v9, %v19_v8  ;;  %v21_v11 = vld [vmem:[%s1150_s1 + $0x30] sm:$0xff]  ;;  %v22_v12 = vld [vmem:[%s1150_s1 + $0x38] sm:$0xff]  ;;  %v23_v14 = vld [vmem:[%s1150_s1 + $0x40] sm:$0xff] }
   0x4   :  { %790 = vmatpush3.bf16.xpose.msra.mxu0 %v973_v4  ;;  %814 = vmatpush3.bf16.msra.mxu1 %v973_v4  ;;  %v1010_v13 = vpack.c.bf16 %v22_v12, %v21_v11  ;;  %v24_v15 = vld [vmem:[%s1150_s1 + $0x48] sm:$0xff]  ;;  %v25_v17 = vld [vmem:[%s1150_s1 + $0x50] sm:$0xff]  ;;  %v26_v18 = vld [vmem:[%s1150_s1 + $0x58] sm:$0xff] }
   0x5   :  { %791 = vmatprep.subr.bf16.mxu0 %v938_v0  ;;  %815 = vmatprep.subr.bf16.mxu1 %v938_v0  ;;  %v1020_v16 = vpack.c.bf16 %v24_v15, %v23_v14  ;;  %v1032_v19 = vpack.c.bf16 %v26_v18, %v25_v17  ;;  %v27_v20 = vld [vmem:[%s1150_s1 + $0x60] sm:$0xff]  ;;  %v28_v21 = vld [vmem:[%s1150_s1 + $0x68] sm:$0xff]  ;;  %v29_v23 = vld [vmem:[%s1150_s1 + $0x70] sm:$0xff] }
   0x6   :  { %v1042_v22 = vpack.c.bf16 %v28_v21, %v27_v20  ;;  %v30_v24 = vld [vmem:[%s1150_s1 + $0x78] sm:$0xff]  ;;  %v14_v26 = vld [vmem:[%s1151_s0] sm:$0xff] }
   0x7   :  { %v1054_v25 = vpack.c.bf16 %v30_v24, %v29_v23  ;;  %v1090_v27 = vld [vmem:[%s1152_s2] ss:$0 sm:$0xff] }
   0x8   :  { %817 = vmatpush3.bf16.msra.mxu1 %v988_v7 }
   0x9   :  { %818 = vmatprep.subr.bf16.mxu1 %v938_v0 }
   0xc   :  { %793 = vmatpush3.bf16.xpose.msra.mxu0 %v988_v7  ;;  %820 = vmatpush3.bf16.msra.mxu1 %v998_v10 }
   0xd   :  { %794 = vmatprep.subr.bf16.mxu0 %v938_v0  ;;  %821 = vmatprep.subr.bf16.mxu1 %v938_v0 }
  0x10   :  { %823 = vmatpush3.bf16.msra.mxu1 %v1010_v13 }
  0x11   :  { %824 = vmatprep.subr.bf16.mxu1 %v938_v0 }
  0x14   :  { %796 = vmatpush3.bf16.xpose.msra.mxu0 %v998_v10  ;;  %826 = vmatpush3.bf16.msra.mxu1 %v1020_v16 }
  0x15   :  { %797 = vmatprep.subr.bf16.mxu0 %v938_v0  ;;  %827 = vmatprep.subr.bf16.mxu1 %v938_v0 }
  0x18   :  { %829 = vmatpush3.bf16.msra.mxu1 %v1032_v19 }
  0x19   :  { %830 = vmatprep.subr.bf16.mxu1 %v938_v0 }
  0x1c   :  { %799 = vmatpush3.bf16.xpose.msra.mxu0 %v1010_v13  ;;  %832 = vmatpush3.bf16.msra.mxu1 %v1042_v22 }
  0x1d   :  { %800 = vmatprep.subr.bf16.mxu0 %v938_v0  ;;  %833 = vmatprep.subr.bf16.mxu1 %v938_v0 }
  0x20   :  { %835 = vmatpush3.bf16.msra.mxu1 %v1054_v25 }
  0x21   :  { %836 = vmatprep.subr.bf16.mxu1 %v938_v0 }
  0x24   :  { %802 = vmatpush3.bf16.xpose.msra.mxu0 %v1020_v16 }
  0x25   :  { %803 = vmatprep.subr.bf16.mxu0 %v938_v0 }
  0x2c   :  { %805 = vmatpush3.bf16.xpose.msra.mxu0 %v1032_v19 }
  0x2d   :  { %806 = vmatprep.subr.bf16.mxu0 %v938_v0 }
  0x34   :  { %808 = vmatpush3.bf16.xpose.msra.mxu0 %v1042_v22 }
  0x35   :  { %809 = vmatprep.subr.bf16.mxu0 %v938_v0 }
  0x3c   :  { %811 = vmatpush3.bf16.xpose.msra.mxu0 %v1054_v25 }
  0x3d   :  { %860 = vmatprep.subr.bf16.mxu0 %v938_v0 }
  0x43   :  { %611 = vmatmul.mubr.f32.vlgmr.msra.gmra.mrb[0].mxu0 %v14_v26 }
  0x44   :  { %862 = vmatpush3.bf16.msra.mxu0 %v973_v4  ;;  %715 = vmatprep.mubr.msk.f32.mxu0 %vm939_vm0, %v940_v3 }
  0x45   :  { %863 = vmatprep.subr.bf16.mxu0 %v938_v0 }
  0x48   :  { %865 = vmatpush3.bf16.msra.mxu0 %v988_v7 }
  0x49   :  { %866 = vmatprep.subr.bf16.mxu0 %v938_v0 }
  0x4c   :  { %868 = vmatpush3.bf16.msra.mxu0 %v998_v10 }
  0x4d   :  { %869 = vmatprep.subr.bf16.mxu0 %v938_v0 }
  0x50   :  { %871 = vmatpush3.bf16.msra.mxu0 %v1010_v13 }
  0x51   :  { %872 = vmatprep.subr.bf16.mxu0 %v938_v0 }
  0x54   :  { %874 = vmatpush3.bf16.msra.mxu0 %v1020_v16 }
  0x55   :  { %875 = vmatprep.subr.bf16.mxu0 %v938_v0 }
  0x58   :  { %877 = vmatpush3.bf16.msra.mxu0 %v1032_v19 }
  0x59   :  { %878 = vmatprep.subr.bf16.mxu0 %v938_v0 }
  0x5c   :  { %880 = vmatpush3.bf16.msra.mxu0 %v1042_v22 }
  0x5d   :  { %881 = vmatprep.subr.bf16.mxu0 %v938_v0 }
  0x60   :  { %883 = vmatpush3.bf16.msra.mxu0 %v1054_v25 }
  0x61   :  { %884 = vmatprep.subr.bf16.mxu0 %v938_v0 }
 0x116   :  { %v98_v28 = vpop.f32.mrb[0].mxu0 }
 0x117   :  { %vm108_vm1 = vcmp.gt.f32.partialorder %v98_v28, %v1090_v27  ;;  %v612_v29 = vpop.f32.mrb[1].mxu0 }
 0x118   :  { %646 = vmatmul.mubr.msk.f32.vlgmr.msra.gmra.mrb[0].mxu1 %vm108_vm1, %v941_v30 }
 0x119   :  { %838 = vmatpush3.bf16.xpose.msra.mxu1 %v973_v4  ;;  %680 = vmatprep.mubr.msk.f32.mxu1 %vm939_vm0, %v940_v3 }
 0x11a   :  { %839 = vmatprep.subr.bf16.mxu1 %v938_v0 }
 0x121   :  { %841 = vmatpush3.bf16.xpose.msra.mxu1 %v988_v7 }
 0x122   :  { %842 = vmatprep.subr.bf16.mxu1 %v938_v0 }
 0x129   :  { %844 = vmatpush3.bf16.xpose.msra.mxu1 %v998_v10 }
 0x12a   :  { %845 = vmatprep.subr.bf16.mxu1 %v938_v0 }
 0x131   :  { %847 = vmatpush3.bf16.xpose.msra.mxu1 %v1010_v13 }
 0x132   :  { %848 = vmatprep.subr.bf16.mxu1 %v938_v0 }
 0x139   :  { %850 = vmatpush3.bf16.xpose.msra.mxu1 %v1020_v16 }
 0x13a   :  { %851 = vmatprep.subr.bf16.mxu1 %v938_v0 }
 0x141   :  { %853 = vmatpush3.bf16.xpose.msra.mxu1 %v1032_v19 }
 0x142   :  { %854 = vmatprep.subr.bf16.mxu1 %v938_v0 }
 0x149   :  { %856 = vmatpush3.bf16.xpose.msra.mxu1 %v1042_v22 }
 0x14a   :  { %857 = vmatprep.subr.bf16.mxu1 %v938_v0 }
 0x151   :  { %859 = vmatpush3.bf16.xpose.msra.mxu1 %v1054_v25 }
 0x152   :  { %908 = vmatprep.subr.bf16.mxu1 %v938_v0 }
 0x1eb   :  { %v176_v31 = vpop.f32.mrb[0].mxu1 }
 0x1ec   :  { %v180_v32 = vsub.f32 %v14_v26, %v176_v31  ;;  %v647_v33 = vpop.f32.mrb[1].mxu1 }
 0x1ee   :  { %681 = vmatmul.mubr.f32.vlgmr.msra.gmra.mrb[2].mxu1 %v180_v32 }
 0x1ef   :  { %910 = vmatpush3.bf16.msra.mxu1 %v973_v4  ;;  %785 = vmatprep.mubr.msk.f32.mxu1 %vm939_vm0, %v940_v3 }
 0x1f0   :  { %911 = vmatprep.subr.bf16.mxu1 %v938_v0 }
 0x1f3   :  { %913 = vmatpush3.bf16.msra.mxu1 %v988_v7 }
 0x1f4   :  { %914 = vmatprep.subr.bf16.mxu1 %v938_v0 }
 0x1f7   :  { %916 = vmatpush3.bf16.msra.mxu1 %v998_v10 }
 0x1f8   :  { %917 = vmatprep.subr.bf16.mxu1 %v938_v0 }
 0x1fb   :  { %919 = vmatpush3.bf16.msra.mxu1 %v1010_v13 }
 0x1fc   :  { %920 = vmatprep.subr.bf16.mxu1 %v938_v0 }
 0x1ff   :  { %922 = vmatpush3.bf16.msra.mxu1 %v1020_v16 }
 0x200   :  { %923 = vmatprep.subr.bf16.mxu1 %v938_v0 }
 0x203   :  { %925 = vmatpush3.bf16.msra.mxu1 %v1032_v19 }
 0x204   :  { %926 = vmatprep.subr.bf16.mxu1 %v938_v0 }
 0x207   :  { %928 = vmatpush3.bf16.msra.mxu1 %v1042_v22 }
 0x208   :  { %929 = vmatprep.subr.bf16.mxu1 %v938_v0 }
 0x20b   :  { %931 = vmatpush3.bf16.msra.mxu1 %v1054_v25 }
 0x2c1   :  { %v247_v34 = vpop.f32.mrb[2].mxu1 }
 0x2c2   :  { %vm251_vm2 = vcmp.gt.f32.partialorder %v247_v34, %v1090_v27  ;;  %v682_v35 = vpop.f32.mrb[3].mxu1 }
 0x2c3   :  { %716 = vmatmul.mubr.msk.f32.vlgmr.msra.gmra.mrb[2].mxu0 %vm251_vm2, %v942_v36 }
 0x2c4   :  { %886 = vmatpush3.bf16.xpose.msra.mxu0 %v973_v4  ;;  %750 = vmatprep.mubr.msk.f32.mxu0 %vm939_vm0, %v940_v3 }
 0x2c5   :  { %887 = vmatprep.subr.bf16.mxu0 %v938_v0 }
 0x2cc   :  { %889 = vmatpush3.bf16.xpose.msra.mxu0 %v988_v7 }
 0x2cd   :  { %890 = vmatprep.subr.bf16.mxu0 %v938_v0 }
 0x2d4   :  { %892 = vmatpush3.bf16.xpose.msra.mxu0 %v998_v10 }
 0x2d5   :  { %893 = vmatprep.subr.bf16.mxu0 %v938_v0 }
 0x2dc   :  { %895 = vmatpush3.bf16.xpose.msra.mxu0 %v1010_v13 }
 0x2dd   :  { %896 = vmatprep.subr.bf16.mxu0 %v938_v0 }
 0x2e4   :  { %898 = vmatpush3.bf16.xpose.msra.mxu0 %v1020_v16 }
 0x2e5   :  { %899 = vmatprep.subr.bf16.mxu0 %v938_v0 }
 0x2ec   :  { %901 = vmatpush3.bf16.xpose.msra.mxu0 %v1032_v19 }
 0x2ed   :  { %902 = vmatprep.subr.bf16.mxu0 %v938_v0 }
 0x2f4   :  { %904 = vmatpush3.bf16.xpose.msra.mxu0 %v1042_v22 }
 0x2f5   :  { %905 = vmatprep.subr.bf16.mxu0 %v938_v0 }
 0x2fc   :  { %907 = vmatpush3.bf16.xpose.msra.mxu0 %v1054_v25 }
 0x396   :  { %v319_v37 = vpop.f32.mrb[2].mxu0 }
 0x397   :  { %v323_v38 = vsub.f32 %v180_v32, %v319_v37  ;;  %v717_v39 = vpop.f32.mrb[3].mxu0 }
 0x399   :  { %751 = vmatmul.mubr.f32.vlgmr.msra.gmra.mrb[4].mxu0 %v323_v38 }
 0x46c   :  { %v390_v40 = vpop.f32.mrb[4].mxu0 }
 0x46d   :  { %vm394_vm3 = vcmp.gt.f32.partialorder %v390_v40, %v1090_v27  ;;  %v752_v41 = vpop.f32.mrb[5].mxu0 }
 0x46e   :  { %786 = vmatmul.mubr.msk.f32.vlgmr.msra.gmra.mrb[4].mxu1 %vm394_vm3, %v943_v42 }
 0x541   :  { %v462_v43 = vpop.f32.mrb[4].mxu1 }
 0x542   :  { %v466_v44 = vsub.f32 %v323_v38, %v462_v43  ;;  %v787_v45 = vpop.f32.mrb[5].mxu1 }
 0x544   :  { %467 = vst [vmem:[%s1153_s3] sm:$0xff] %v466_v44 }

// kernel: fn.1
= control target key start
LH: loop header
LB: loop body
LE: loop exit
PB: predicated region body
PF: predicated region fallthrough
CT: control target
= control target key end

     0   :  { %v938_v0 = vmov 0.0|0.0   ;;  %vm939_vm0 = vmmov 0   ;;  %v940_v3 = vmov 0.0   ;;  %v941_v30 = vmov 0.000625   ;;  %s1150_s1 = inlined_call_operand.vmem [shape: f32[128,128], index: 1, kind: input, shape index: {}]   ;;  %s1151_s0 = inlined_call_operand.vmem [shape: f32[8,128], index: 0, kind: input, shape index: {}, may-alias: {0,3}]   ;;  %s1152_s2 = inlined_call_operand.vmem [shape: f32[1,128], index: 2, kind: input, shape index: {}]   ;;  %s1153_s3 = inlined_call_operand.vmem [shape: f32[8,128], index: 3, kind: output, shape index: {}, may-alias: {0,3}]  }
   0x1   :  { %788 = vmatprep.subr.bf16.mxu0 %v938_v0  ;;  %v15_v1 = vld [vmem:[%s1150_s1] sm:$0xff]  ;;  %v16_v2 = vld [vmem:[%s1150_s1 + $0x8] sm:$0xff]  ;;  %610 = vmatprep.mubr.msk.f32.mxu0 %vm939_vm0, %v940_v3  ;;  %v17_v5 = vld [vmem:[%s1150_s1 + $0x10] sm:$0xff]  ;;  %v942_v36 = vmov 6.25e-05  }
   0x2   :  { %v973_v4 = vpack.c.bf16 %v16_v2, %v15_v1  ;;  %812 = vmatprep.subr.bf16.mxu1 %v938_v0  ;;  %645 = vmatprep.mubr.msk.f32.mxu1 %vm939_vm0, %v940_v3  ;;  %v18_v6 = vld [vmem:[%s1150_s1 + $0x18] sm:$0xff]  ;;  %v19_v8 = vld [vmem:[%s1150_s1 + $0x20] sm:$0xff]  ;;  %v20_v9 = vld [vmem:[%s1150_s1 + $0x28] sm:$0xff]  ;;  %v943_v42 = vmov 6.25e-06  }
   0x3   :  { %v988_v7 = vpack.c.bf16 %v18_v6, %v17_v5  ;;  %v998_v10 = vpack.c.bf16 %v20_v9, %v19_v8  ;;  %v21_v11 = vld [vmem:[%s1150_s1 + $0x30] sm:$0xff]  ;;  %v22_v12 = vld [vmem:[%s1150_s1 + $0x38] sm:$0xff]  ;;  %v23_v14 = vld [vmem:[%s1150_s1 + $0x40] sm:$0xff] }
   0x4   :  { %790 = vmatpush3.bf16.xpose.msra.mxu0 %v973_v4  ;;  %814 = vmatpush3.bf16.msra.mxu1 %v973_v4  ;;  %v1010_v13 = vpack.c.bf16 %v22_v12, %v21_v11  ;;  %v24_v15 = vld [vmem:[%s1150_s1 + $0x48] sm:$0xff]  ;;  %v25_v17 = vld [vmem:[%s1150_s1 + $0x50] sm:$0xff]  ;;  %v26_v18 = vld [vmem:[%s1150_s1 + $0x58] sm:$0xff] }
   0x5   :  { %791 = vmatprep.subr.bf16.mxu0 %v938_v0  ;;  %815 = vmatprep.subr.bf16.mxu1 %v938_v0  ;;  %v1020_v16 = vpack.c.bf16 %v24_v15, %v23_v14  ;;  %v1032_v19 = vpack.c.bf16 %v26_v18, %v25_v17  ;;  %v27_v20 = vld [vmem:[%s1150_s1 + $0x60] sm:$0xff]  ;;  %v28_v21 = vld [vmem:[%s1150_s1 + $0x68] sm:$0xff]  ;;  %v29_v23 = vld [vmem:[%s1150_s1 + $0x70] sm:$0xff] }
   0x6   :  { %v1042_v22 = vpack.c.bf16 %v28_v21, %v27_v20  ;;  %v30_v24 = vld [vmem:[%s1150_s1 + $0x78] sm:$0xff]  ;;  %v14_v26 = vld [vmem:[%s1151_s0] sm:$0xff] }
   0x7   :  { %v1054_v25 = vpack.c.bf16 %v30_v24, %v29_v23  ;;  %v1090_v27 = vld [vmem:[%s1152_s2] ss:$0 sm:$0xff] }
   0x8   :  { %817 = vmatpush3.bf16.msra.mxu1 %v988_v7 }
   0x9   :  { %818 = vmatprep.subr.bf16.mxu1 %v938_v0 }
   0xc   :  { %793 = vmatpush3.bf16.xpose.msra.mxu0 %v988_v7  ;;  %820 = vmatpush3.bf16.msra.mxu1 %v998_v10 }
   0xd   :  { %794 = vmatprep.subr.bf16.mxu0 %v938_v0  ;;  %821 = vmatprep.subr.bf16.mxu1 %v938_v0 }
  0x10   :  { %823 = vmatpush3.bf16.msra.mxu1 %v1010_v13 }
  0x11   :  { %824 = vmatprep.subr.bf16.mxu1 %v938_v0 }
  0x14   :  { %796 = vmatpush3.bf16.xpose.msra.mxu0 %v998_v10  ;;  %826 = vmatpush3.bf16.msra.mxu1 %v1020_v16 }
  0x15   :  { %797 = vmatprep.subr.bf16.mxu0 %v938_v0  ;;  %827 = vmatprep.subr.bf16.mxu1 %v938_v0 }
  0x18   :  { %829 = vmatpush3.bf16.msra.mxu1 %v1032_v19 }
  0x19   :  { %830 = vmatprep.subr.bf16.mxu1 %v938_v0 }
  0x1c   :  { %799 = vmatpush3.bf16.xpose.msra.mxu0 %v1010_v13  ;;  %832 = vmatpush3.bf16.msra.mxu1 %v1042_v22 }
  0x1d   :  { %800 = vmatprep.subr.bf16.mxu0 %v938_v0  ;;  %833 = vmatprep.subr.bf16.mxu1 %v938_v0 }
  0x20   :  { %835 = vmatpush3.bf16.msra.mxu1 %v1054_v25 }
  0x21   :  { %836 = vmatprep.subr.bf16.mxu1 %v938_v0 }
  0x24   :  { %802 = vmatpush3.bf16.xpose.msra.mxu0 %v1020_v16 }
  0x25   :  { %803 = vmatprep.subr.bf16.mxu0 %v938_v0 }
  0x2c   :  { %805 = vmatpush3.bf16.xpose.msra.mxu0 %v1032_v19 }
  0x2d   :  { %806 = vmatprep.subr.bf16.mxu0 %v938_v0 }
  0x34   :  { %808 = vmatpush3.bf16.xpose.msra.mxu0 %v1042_v22 }
  0x35   :  { %809 = vmatprep.subr.bf16.mxu0 %v938_v0 }
  0x3c   :  { %811 = vmatpush3.bf16.xpose.msra.mxu0 %v1054_v25 }
  0x3d   :  { %860 = vmatprep.subr.bf16.mxu0 %v938_v0 }
  0x43   :  { %611 = vmatmul.mubr.f32.vlgmr.msra.gmra.mrb[0].mxu0 %v14_v26 }
  0x44   :  { %862 = vmatpush3.bf16.msra.mxu0 %v973_v4  ;;  %715 = vmatprep.mubr.msk.f32.mxu0 %vm939_vm0, %v940_v3 }
  0x45   :  { %863 = vmatprep.subr.bf16.mxu0 %v938_v0 }
  0x48   :  { %865 = vmatpush3.bf16.msra.mxu0 %v988_v7 }
  0x49   :  { %866 = vmatprep.subr.bf16.mxu0 %v938_v0 }
  0x4c   :  { %868 = vmatpush3.bf16.msra.mxu0 %v998_v10 }
  0x4d   :  { %869 = vmatprep.subr.bf16.mxu0 %v938_v0 }
  0x50   :  { %871 = vmatpush3.bf16.msra.mxu0 %v1010_v13 }
  0x51   :  { %872 = vmatprep.subr.bf16.mxu0 %v938_v0 }
  0x54   :  { %874 = vmatpush3.bf16.msra.mxu0 %v1020_v16 }
  0x55   :  { %875 = vmatprep.subr.bf16.mxu0 %v938_v0 }
  0x58   :  { %877 = vmatpush3.bf16.msra.mxu0 %v1032_v19 }
  0x59   :  { %878 = vmatprep.subr.bf16.mxu0 %v938_v0 }
  0x5c   :  { %880 = vmatpush3.bf16.msra.mxu0 %v1042_v22 }
  0x5d   :  { %881 = vmatprep.subr.bf16.mxu0 %v938_v0 }
  0x60   :  { %883 = vmatpush3.bf16.msra.mxu0 %v1054_v25 }
  0x61   :  { %884 = vmatprep.subr.bf16.mxu0 %v938_v0 }
 0x116   :  { %v98_v28 = vpop.f32.mrb[0].mxu0 }
 0x117   :  { %vm108_vm1 = vcmp.gt.f32.partialorder %v98_v28, %v1090_v27  ;;  %v612_v29 = vpop.f32.mrb[1].mxu0 }
 0x118   :  { %646 = vmatmul.mubr.msk.f32.vlgmr.msra.gmra.mrb[0].mxu1 %vm108_vm1, %v941_v30 }
 0x119   :  { %838 = vmatpush3.bf16.xpose.msra.mxu1 %v973_v4  ;;  %680 = vmatprep.mubr.msk.f32.mxu1 %vm939_vm0, %v940_v3 }
 0x11a   :  { %839 = vmatprep.subr.bf16.mxu1 %v938_v0 }
 0x121   :  { %841 = vmatpush3.bf16.xpose.msra.mxu1 %v988_v7 }
 0x122   :  { %842 = vmatprep.subr.bf16.mxu1 %v938_v0 }
 0x129   :  { %844 = vmatpush3.bf16.xpose.msra.mxu1 %v998_v10 }
 0x12a   :  { %845 = vmatprep.subr.bf16.mxu1 %v938_v0 }
 0x131   :  { %847 = vmatpush3.bf16.xpose.msra.mxu1 %v1010_v13 }
 0x132   :  { %848 = vmatprep.subr.bf16.mxu1 %v938_v0 }
 0x139   :  { %850 = vmatpush3.bf16.xpose.msra.mxu1 %v1020_v16 }
 0x13a   :  { %851 = vmatprep.subr.bf16.mxu1 %v938_v0 }
 0x141   :  { %853 = vmatpush3.bf16.xpose.msra.mxu1 %v1032_v19 }
 0x142   :  { %854 = vmatprep.subr.bf16.mxu1 %v938_v0 }
 0x149   :  { %856 = vmatpush3.bf16.xpose.msra.mxu1 %v1042_v22 }
 0x14a   :  { %857 = vmatprep.subr.bf16.mxu1 %v938_v0 }
 0x151   :  { %859 = vmatpush3.bf16.xpose.msra.mxu1 %v1054_v25 }
 0x152   :  { %908 = vmatprep.subr.bf16.mxu1 %v938_v0 }
 0x1eb   :  { %v176_v31 = vpop.f32.mrb[0].mxu1 }
 0x1ec   :  { %v180_v32 = vsub.f32 %v14_v26, %v176_v31  ;;  %v647_v33 = vpop.f32.mrb[1].mxu1 }
 0x1ee   :  { %681 = vmatmul.mubr.f32.vlgmr.msra.gmra.mrb[2].mxu1 %v180_v32 }
 0x1ef   :  { %910 = vmatpush3.bf16.msra.mxu1 %v973_v4  ;;  %785 = vmatprep.mubr.msk.f32.mxu1 %vm939_vm0, %v940_v3 }
 0x1f0   :  { %911 = vmatprep.subr.bf16.mxu1 %v938_v0 }
 0x1f3   :  { %913 = vmatpush3.bf16.msra.mxu1 %v988_v7 }
 0x1f4   :  { %914 = vmatprep.subr.bf16.mxu1 %v938_v0 }
 0x1f7   :  { %916 = vmatpush3.bf16.msra.mxu1 %v998_v10 }
 0x1f8   :  { %917 = vmatprep.subr.bf16.mxu1 %v938_v0 }
 0x1fb   :  { %919 = vmatpush3.bf16.msra.mxu1 %v1010_v13 }
 0x1fc   :  { %920 = vmatprep.subr.bf16.mxu1 %v938_v0 }
 0x1ff   :  { %922 = vmatpush3.bf16.msra.mxu1 %v1020_v16 }
 0x200   :  { %923 = vmatprep.subr.bf16.mxu1 %v938_v0 }
 0x203   :  { %925 = vmatpush3.bf16.msra.mxu1 %v1032_v19 }
 0x204   :  { %926 = vmatprep.subr.bf16.mxu1 %v938_v0 }
 0x207   :  { %928 = vmatpush3.bf16.msra.mxu1 %v1042_v22 }
 0x208   :  { %929 = vmatprep.subr.bf16.mxu1 %v938_v0 }
 0x20b   :  { %931 = vmatpush3.bf16.msra.mxu1 %v1054_v25 }
 0x2c1   :  { %v247_v34 = vpop.f32.mrb[2].mxu1 }
 0x2c2   :  { %vm251_vm2 = vcmp.gt.f32.partialorder %v247_v34, %v1090_v27  ;;  %v682_v35 = vpop.f32.mrb[3].mxu1 }
 0x2c3   :  { %716 = vmatmul.mubr.msk.f32.vlgmr.msra.gmra.mrb[2].mxu0 %vm251_vm2, %v942_v36 }
 0x2c4   :  { %886 = vmatpush3.bf16.xpose.msra.mxu0 %v973_v4  ;;  %750 = vmatprep.mubr.msk.f32.mxu0 %vm939_vm0, %v940_v3 }
 0x2c5   :  { %887 = vmatprep.subr.bf16.mxu0 %v938_v0 }
 0x2cc   :  { %889 = vmatpush3.bf16.xpose.msra.mxu0 %v988_v7 }
 0x2cd   :  { %890 = vmatprep.subr.bf16.mxu0 %v938_v0 }
 0x2d4   :  { %892 = vmatpush3.bf16.xpose.msra.mxu0 %v998_v10 }
 0x2d5   :  { %893 = vmatprep.subr.bf16.mxu0 %v938_v0 }
 0x2dc   :  { %895 = vmatpush3.bf16.xpose.msra.mxu0 %v1010_v13 }
 0x2dd   :  { %896 = vmatprep.subr.bf16.mxu0 %v938_v0 }
 0x2e4   :  { %898 = vmatpush3.bf16.xpose.msra.mxu0 %v1020_v16 }
 0x2e5   :  { %899 = vmatprep.subr.bf16.mxu0 %v938_v0 }
 0x2ec   :  { %901 = vmatpush3.bf16.xpose.msra.mxu0 %v1032_v19 }
 0x2ed   :  { %902 = vmatprep.subr.bf16.mxu0 %v938_v0 }
 0x2f4   :  { %904 = vmatpush3.bf16.xpose.msra.mxu0 %v1042_v22 }
 0x2f5   :  { %905 = vmatprep.subr.bf16.mxu0 %v938_v0 }
 0x2fc   :  { %907 = vmatpush3.bf16.xpose.msra.mxu0 %v1054_v25 }
 0x396   :  { %v319_v37 = vpop.f32.mrb[2].mxu0 }
 0x397   :  { %v323_v38 = vsub.f32 %v180_v32, %v319_v37  ;;  %v717_v39 = vpop.f32.mrb[3].mxu0 }
 0x399   :  { %751 = vmatmul.mubr.f32.vlgmr.msra.gmra.mrb[4].mxu0 %v323_v38 }
 0x46c   :  { %v390_v40 = vpop.f32.mrb[4].mxu0 }
 0x46d   :  { %vm394_vm3 = vcmp.gt.f32.partialorder %v390_v40, %v1090_v27  ;;  %v752_v41 = vpop.f32.mrb[5].mxu0 }
 0x46e   :  { %786 = vmatmul.mubr.msk.f32.vlgmr.msra.gmra.mrb[4].mxu1 %vm394_vm3, %v943_v42 }
 0x541   :  { %v462_v43 = vpop.f32.mrb[4].mxu1 }
 0x542   :  { %v466_v44 = vsub.f32 %v323_v38, %v462_v43  ;;  %v787_v45 = vpop.f32.mrb[5].mxu1 }
 0x544   :  { %467 = vst [vmem:[%s1153_s3] sm:$0xff] %v466_v44 }

</bundles_post_ra>
